<compile_context>
chip_gen: v7x
topology: tpu7x:2x2x1
jax: 0.10.0
libtpu: 0.0.40
codegen_flags: <defaults>
</compile_context>

<pallas_src>
import jax
import jax.numpy as jnp
from jax.experimental import pallas as pl
from jax.experimental.pallas import tpu as pltpu


def _round_up(x: int, m: int) -> int:
    return ((x + m - 1) // m) * m


def _pad2d(a, rows, cols):
    return jnp.pad(a, ((0, rows - a.shape[0]), (0, cols - a.shape[1])))


def _qnet_kernel(x_ref, w1_ref, b1_ref, w2_ref, b2_ref, w3_ref, b3_ref, o_ref):
    """One batch tile: (TM, K) bf16 -> (TM, A) f32. Weights/biases are resident."""
    x = x_ref[...]  # bf16

    # Layer 1: Linear (bf16 MXU, f32 accumulate) + bias/ReLU in f32.
    h1 = jnp.dot(x, w1_ref[...], preferred_element_type=jnp.float32) + b1_ref[...]
    h1 = jnp.maximum(h1, 0.0).astype(jnp.bfloat16)

    # Layer 2: Linear + ReLU.
    h2 = jnp.dot(h1, w2_ref[...], preferred_element_type=jnp.float32) + b2_ref[...]
    h2 = jnp.maximum(h2, 0.0).astype(jnp.bfloat16)

    # Layer 3: Linear (q-values, no activation), stored at real action width.
    q = jnp.dot(h2, w3_ref[...], preferred_element_type=jnp.float32) + b3_ref[...]
    o_ref[...] = q.astype(o_ref.dtype)


def prepare_qnetwork_params(params, *, matmul_dtype=jnp.bfloat16):
    """One-time pad (hidden -> x128, obs-width -> x8) and cast of the weights.

    Zero-padded rows/columns are exact through ReLU and f32 accumulation.
    """
    w1, b1, w2, b2, w3, b3 = params
    k_in, hidden = w1.shape
    action_size = w3.shape[1]

    K = _round_up(k_in, 8)       # sublane alignment only; no 128-lane blowup
    H = _round_up(hidden, 128)   # hidden dims hit native MXU/vreg tiles

    w1_p = _pad2d(w1.astype(jnp.float32), K, H).astype(matmul_dtype)
    w2_p = _pad2d(w2.astype(jnp.float32), H, H).astype(matmul_dtype)
    w3_p = _pad2d(w3.astype(jnp.float32), H, action_size).astype(matmul_dtype)
    b1_p = _pad2d(b1.reshape(1, -1).astype(jnp.float32), 1, H)
    b2_p = _pad2d(b2.reshape(1, -1).astype(jnp.float32), 1, H)
    b3_p = b3.reshape(1, -1).astype(jnp.float32)
    return (w1_p, b1_p, w2_p, b2_p, w3_p, b3_p)


def _choose_tiling(batch: int, max_tile_rows: int):
    """Pick (tm, num_tiles) minimizing pad waste; >=2 steps when batch > 8 (v7x)."""
    if batch <= 8:
        num_tiles = 1
    else:
        num_tiles = max(2, -(-batch // max_tile_rows))
    tm = _round_up(-(-batch // num_tiles), 8)
    return tm, num_tiles


def qnetwork_forward(obs, prepared_params, *, max_tile_rows=1024):
    """obs: (batch, *obs_size) -> q-values (batch, action_size) float32."""
    w1_p, b1_p, w2_p, b2_p, w3_p, b3_p = prepared_params
    batch = obs.shape[0]
    obs_flat = obs.reshape(batch, -1)            # like obs.view(B, -1)

    K = w1_p.shape[0]          # obs width rounded to a multiple of 8
    H = w1_p.shape[1]          # padded hidden (multiple of 128)
    A = w3_p.shape[1]          # real action width (no padding)

    tm, num_tiles = _choose_tiling(batch, max_tile_rows)
    batch_pad = tm * num_tiles

    # Stream obs in bf16 at (near-)native width; pad is a no-op when already aligned.
    x_p = jnp.pad(
        obs_flat.astype(jnp.float32),
        ((0, batch_pad - batch), (0, K - obs_flat.shape[1])),
    ).astype(w1_p.dtype)

    const = lambda shape: pl.BlockSpec(shape, lambda i: (0,) * len(shape))

    out_p = pl.pallas_call(
        _qnet_kernel,
        out_shape=jax.ShapeDtypeStruct((batch_pad, A), jnp.float32),
        grid=(num_tiles,),
        in_specs=[
            pl.BlockSpec((tm, K), lambda i: (i, 0)),   # streamed obs tile
            const((K, H)),                             # resident weights / biases
            const((1, H)),
            const((H, H)),
            const((1, H)),
            const((H, A)),
            const((1, A)),
        ],
        out_specs=pl.BlockSpec((tm, A), lambda i: (i, 0)),
        compiler_params=pltpu.CompilerParams(
            dimension_semantics=("parallel",),
        ),
    )(x_p, w1_p, b1_p, w2_p, b2_p, w3_p, b3_p)

    return out_p[:batch]


def init_qnetwork_params(key, obs_flat_size, action_size, hidden_size=100):
    """Deterministic PyTorch-style init: U(-1/sqrt(fan_in), 1/sqrt(fan_in))."""
    dims = [(obs_flat_size, hidden_size),
            (hidden_size, hidden_size),
            (hidden_size, action_size)]
    params = []
    for (fan_in, fan_out) in dims:
        key, kw, kb = jax.random.split(key, 3)
        bound = 1.0 / (fan_in ** 0.5)
        w = jax.random.uniform(kw, (fan_in, fan_out), jnp.float32, -bound, bound)
        b = jax.random.uniform(kb, (fan_out,), jnp.float32, -bound, bound)
        params += [w, b]
    return tuple(params)


if __name__ == "__main__":
    # Small shapes consistent with the module: obs_size=(4, 4) -> obs_flat=16,
    # action_size=4, hidden_size=32, batch=2.
    batch, obs_shape, action_size, hidden_size = 2, (4, 4), 4, 32
    obs_flat_size = 1
    for d in obs_shape:
        obs_flat_size *= d

    key = jax.random.PRNGKey(0)
    key, k_obs = jax.random.split(key)
    obs = jax.random.normal(k_obs, (batch,) + obs_shape, jnp.float32)

    params = init_qnetwork_params(key, obs_flat_size, action_size, hidden_size)
    prepared = prepare_qnetwork_params(params)   # hoisted out of the forward

    q = qnetwork_forward(obs, prepared)
    jax.block_until_ready(q)

    # References: (a) bf16-matmul reference matching the kernel math (tight),
    #             (b) pure-f32 module semantics (loose, bf16 input rounding).
    w1, b1, w2, b2, w3, b3 = params
    xf = obs.reshape(batch, -1)
    bf = jnp.bfloat16

    h = jnp.maximum(jnp.dot(xf.astype(bf), w1.astype(bf),
                            preferred_element_type=jnp.float32) + b1, 0.0)
    h = jnp.maximum(jnp.dot(h.astype(bf), w2.astype(bf),
                            preferred_element_type=jnp.float32) + b2, 0.0)
    ref_bf16 = jnp.dot(h.astype(bf), w3.astype(bf),
                       preferred_element_type=jnp.float32) + b3

    ref_f32 = jnp.maximum(xf @ w1 + b1, 0.0)
    ref_f32 = jnp.maximum(ref_f32 @ w2 + b2, 0.0)
    ref_f32 = ref_f32 @ w3 + b3

    assert q.shape == (batch, action_size)
    assert jnp.allclose(q, ref_bf16, atol=1e-4, rtol=1e-4)
    assert jnp.allclose(q, ref_f32, atol=5e-2, rtol=5e-2)

    print("KERNEL_OK")
</pallas_src>

<mosaic_0001>
module attributes {stable_mosaic.version = 11 : i64} {
  func.func @_qnet_kernel(%arg0: i32, %arg1: memref<8x16xbf16, #tpu.memory_space<vmem>>, %arg2: memref<16x128xbf16, #tpu.memory_space<vmem>>, %arg3: memref<1x128xf32, #tpu.memory_space<vmem>>, %arg4: memref<128x128xbf16, #tpu.memory_space<vmem>>, %arg5: memref<1x128xf32, #tpu.memory_space<vmem>>, %arg6: memref<128x4xbf16, #tpu.memory_space<vmem>>, %arg7: memref<1x4xf32, #tpu.memory_space<vmem>>, %arg8: memref<8x4xf32, #tpu.memory_space<vmem>>) attributes {dimension_semantics = [#tpu.dimension_semantics<parallel>], iteration_bounds = array<i64: 1>, scalar_prefetch = 0 : i64, scratch_operands = 0 : i64, tpu.core_type = #tpu.core_type<tc>, window_params = [{transform_indices = @transform_0, window_bounds = array<i64: 8, 16>}, {pipeline_mode = #tpu.pipeline_mode<synchronous>, transform_indices = @transform_1, window_bounds = array<i64: 16, 128>}, {pipeline_mode = #tpu.pipeline_mode<synchronous>, transform_indices = @transform_2, window_bounds = array<i64: 1, 128>}, {pipeline_mode = #tpu.pipeline_mode<synchronous>, transform_indices = @transform_3, window_bounds = array<i64: 128, 128>}, {pipeline_mode = #tpu.pipeline_mode<synchronous>, transform_indices = @transform_4, window_bounds = array<i64: 1, 128>}, {pipeline_mode = #tpu.pipeline_mode<synchronous>, transform_indices = @transform_5, window_bounds = array<i64: 128, 4>}, {pipeline_mode = #tpu.pipeline_mode<synchronous>, transform_indices = @transform_6, window_bounds = array<i64: 1, 4>}, {transform_indices = @transform_7, window_bounds = array<i64: 8, 4>}]} {
    %c0 = arith.constant 0 : index
    %c0_0 = arith.constant 0 : index
    %0 = vector.load %arg1[%c0, %c0_0] : memref<8x16xbf16, #tpu.memory_space<vmem>>, vector<8x16xbf16>
    %c0_1 = arith.constant 0 : index
    %c0_2 = arith.constant 0 : index
    %1 = vector.load %arg2[%c0_1, %c0_2] : memref<16x128xbf16, #tpu.memory_space<vmem>>, vector<16x128xbf16>
    %cst = arith.constant dense<0.000000e+00> : vector<8x128xf32>
    %2 = tpu.matmul %0, %1, %cst {dimension_numbers = #tpu.dot_dimension_numbers<[1], [0], [0], [1], [0, 0, 1, 1], [], []>} : vector<8x16xbf16>, vector<16x128xbf16>, vector<8x128xf32> -> vector<8x128xf32>
    %c0_3 = arith.constant 0 : index
    %c0_4 = arith.constant 0 : index
    %3 = vector.load %arg3[%c0_3, %c0_4] : memref<1x128xf32, #tpu.memory_space<vmem>>, vector<1x128xf32>
    %4 = vector.broadcast %3 : vector<1x128xf32> to vector<8x128xf32>
    %5 = arith.addf %2, %4 : vector<8x128xf32>
    %cst_5 = arith.constant 0.000000e+00 : f32
    %6 = vector.broadcast %cst_5 : f32 to vector<8x128xf32>
    %7 = arith.maximumf %5, %6 : vector<8x128xf32>
    %8 = arith.truncf %7 : vector<8x128xf32> to vector<8x128xbf16>
    %c0_6 = arith.constant 0 : index
    %c0_7 = arith.constant 0 : index
    %9 = vector.load %arg4[%c0_6, %c0_7] : memref<128x128xbf16, #tpu.memory_space<vmem>>, vector<128x128xbf16>
    %cst_8 = arith.constant dense<0.000000e+00> : vector<8x128xf32>
    %10 = tpu.matmul %8, %9, %cst_8 {dimension_numbers = #tpu.dot_dimension_numbers<[1], [0], [0], [1], [0, 0, 1, 1], [], []>} : vector<8x128xbf16>, vector<128x128xbf16>, vector<8x128xf32> -> vector<8x128xf32>
    %c0_9 = arith.constant 0 : index
    %c0_10 = arith.constant 0 : index
    %11 = vector.load %arg5[%c0_9, %c0_10] : memref<1x128xf32, #tpu.memory_space<vmem>>, vector<1x128xf32>
    %12 = vector.broadcast %11 : vector<1x128xf32> to vector<8x128xf32>
    %13 = arith.addf %10, %12 : vector<8x128xf32>
    %cst_11 = arith.constant 0.000000e+00 : f32
    %14 = vector.broadcast %cst_11 : f32 to vector<8x128xf32>
    %15 = arith.maximumf %13, %14 : vector<8x128xf32>
    %16 = arith.truncf %15 : vector<8x128xf32> to vector<8x128xbf16>
    %c0_12 = arith.constant 0 : index
    %c0_13 = arith.constant 0 : index
    %17 = vector.load %arg6[%c0_12, %c0_13] : memref<128x4xbf16, #tpu.memory_space<vmem>>, vector<128x4xbf16>
    %cst_14 = arith.constant dense<0.000000e+00> : vector<8x4xf32>
    %18 = tpu.matmul %16, %17, %cst_14 {dimension_numbers = #tpu.dot_dimension_numbers<[1], [0], [0], [1], [0, 0, 1, 1], [], []>} : vector<8x128xbf16>, vector<128x4xbf16>, vector<8x4xf32> -> vector<8x4xf32>
    %c0_15 = arith.constant 0 : index
    %c0_16 = arith.constant 0 : index
    %19 = vector.load %arg7[%c0_15, %c0_16] : memref<1x4xf32, #tpu.memory_space<vmem>>, vector<1x4xf32>
    %20 = vector.broadcast %19 : vector<1x4xf32> to vector<8x4xf32>
    %21 = arith.addf %18, %20 : vector<8x4xf32>
    %c0_17 = arith.constant 0 : index
    %c0_18 = arith.constant 0 : index
    %22 = vector.load %arg8[%c0_17, %c0_18] : memref<8x4xf32, #tpu.memory_space<vmem>>, vector<8x4xf32>
    tpu.vector_store %arg8[%c0_17, %c0_18], %21 {strides = array<i32>} : memref<8x4xf32, #tpu.memory_space<vmem>>, vector<8x4xf32>,
    return
  }
  func.func @transform_0(%arg0: i32) -> (i32, i32) {
    %c0_i32 = arith.constant 0 : i32
    %c0_i32_0 = arith.constant 0 : i32
    return %arg0, %c0_i32 : i32, i32
  }
  func.func @transform_1(%arg0: i32) -> (i32, i32) {
    %c0_i32 = arith.constant 0 : i32
    %c0_i32_0 = arith.constant 0 : i32
    %c0_i32_1 = arith.constant 0 : i32
    return %c0_i32, %c0_i32_0 : i32, i32
  }
  func.func @transform_2(%arg0: i32) -> (i32, i32) {
    %c0_i32 = arith.constant 0 : i32
    %c0_i32_0 = arith.constant 0 : i32
    %c0_i32_1 = arith.constant 0 : i32
    return %c0_i32, %c0_i32_0 : i32, i32
  }
  func.func @transform_3(%arg0: i32) -> (i32, i32) {
    %c0_i32 = arith.constant 0 : i32
    %c0_i32_0 = arith.constant 0 : i32
    %c0_i32_1 = arith.constant 0 : i32
    return %c0_i32, %c0_i32_0 : i32, i32
  }
  func.func @transform_4(%arg0: i32) -> (i32, i32) {
    %c0_i32 = arith.constant 0 : i32
    %c0_i32_0 = arith.constant 0 : i32
    %c0_i32_1 = arith.constant 0 : i32
    return %c0_i32, %c0_i32_0 : i32, i32
  }
  func.func @transform_5(%arg0: i32) -> (i32, i32) {
    %c0_i32 = arith.constant 0 : i32
    %c0_i32_0 = arith.constant 0 : i32
    %c0_i32_1 = arith.constant 0 : i32
    return %c0_i32, %c0_i32_0 : i32, i32
  }
  func.func @transform_6(%arg0: i32) -> (i32, i32) {
    %c0_i32 = arith.constant 0 : i32
    %c0_i32_0 = arith.constant 0 : i32
    %c0_i32_1 = arith.constant 0 : i32
    return %c0_i32, %c0_i32_0 : i32, i32
  }
  func.func @transform_7(%arg0: i32) -> (i32, i32) {
    %c0_i32 = arith.constant 0 : i32
    %c0_i32_0 = arith.constant 0 : i32
    return %arg0, %c0_i32 : i32, i32
  }
}

</mosaic_0001>

<bundles_post_ra>
// kernel: tpu_custom_call.1
= control target key start
LH: loop header
LB: loop body
LE: loop exit
PB: predicated region body
PF: predicated region fallthrough
CT: control target
= control target key end

     0   :  { %v425_v0 = vmov 0.0   ;;  %vm426_vm0 = vmmov 0   ;;  %vm43_vm1 = vcmask 130048   ;;  %vm313_vm2 = vcmask 31744   ;;  %s553_s1 = inlined_call_operand.vmem [shape: bf16[16,128], index: 1, kind: input, shape index: {}]   ;;  %s554_s0 = inlined_call_operand.vmem [shape: bf16[8,16], index: 0, kind: input, shape index: {}]   ;;  %s555_s3 = inlined_call_operand.vmem [shape: bf16[128,128], index: 3, kind: input, shape index: {}]   ;;  %s556_s5 = inlined_call_operand.vmem [shape: bf16[128,4], index: 5, kind: input, shape index: {}]   ;;  %s557_s2 = inlined_call_operand.vmem [shape: f32[1,128], index: 2, kind: input, shape index: {}]   ;;  %s558_s4 = inlined_call_operand.vmem [shape: f32[1,128], index: 4, kind: input, shape index: {}]   ;;  %s559_s6 = inlined_call_operand.vmem [shape: f32[1,4], index: 6, kind: input, shape index: {}]   ;;  %s560_s7 = inlined_call_operand.vmem [shape: f32[8,4], index: 7, kind: output, shape index: {}]  }
   0x1   :  { %360 = vmatprep.subr.bf16.mxu0 %v425_v0  ;;  %v408_v1 = vld [vmem:[%s553_s1] sm:$0xff]   ;;  %362 = vmatprep.mubr.msk.bf16.mxu0 %vm426_vm0, %v425_v0  ;;  %v410_v4 = vld [vmem:[%s555_s3 + $0x8] sm:$0xff]   ;;  %v411_v5 = vld [vmem:[%s555_s3 + $0x10] sm:$0xff]  }
   0x2   :  { %v27_v2 = vld [vmem:[%s554_s0] sm:$0xf]  ;;  %366 = vmatprep.subr.bf16.mxu1 %v425_v0  ;;  %382 = vmatprep.mubr.msk.bf16.mxu1 %vm426_vm0, %v425_v0  ;;  %v412_v6 = vld [vmem:[%s555_s3 + $0x18] sm:$0xff]   ;;  %v414_v8 = vld [vmem:[%s555_s3 + $0x28] sm:$0xff]  }
   0x3   :  { %361 = vmatpush3.bf16.msra.mxu0 %v408_v1  ;;  %v409_v3 = vld [vmem:[%s555_s3] sm:$0xff]   ;;  %v415_v9 = vld [vmem:[%s555_s3 + $0x30] sm:$0xff]   ;;  %v416_v10 = vld [vmem:[%s555_s3 + $0x38] sm:$0xff]  }
   0x4   :  { %386 = vmatprep.subr.bf16.mxu0 %v425_v0  ;;  %367 = vmatpush3.bf16.msra.mxu1 %v409_v3  ;;  %v413_v7 = vld [vmem:[%s555_s3 + $0x20] sm:$0xff]   ;;  %v418_v12 = vld [vmem:[%s556_s5 + $0x8] sm:$0xff]   ;;  %v419_v13 = vld [vmem:[%s556_s5 + $0x10] sm:$0xff]  }
   0x5   :  { %368 = vmatprep.subr.bf16.mxu1 %v425_v0  ;;  %v417_v11 = vld [vmem:[%s556_s5] sm:$0xff]   ;;  %v420_v14 = vld [vmem:[%s556_s5 + $0x18] sm:$0xff]   ;;  %v422_v16 = vld [vmem:[%s556_s5 + $0x28] sm:$0xff]  }
   0x6   :  { %363 = vmatmul.mubr.msk.bf16.vlgmr.msra.gmra.mrb[0].mxu0 %vm43_vm1, %v27_v2  ;;  %v421_v15 = vld [vmem:[%s556_s5 + $0x20] sm:$0xff]   ;;  %v423_v25 = vld [vmem:[%s556_s5 + $0x30] sm:$0xff]   ;;  %v424_v26 = vld [vmem:[%s556_s5 + $0x38] sm:$0xff]  }
   0x7   :  { %402 = vmatprep.mubr.msk.bf16.mxu0 %vm426_vm0, %v425_v0  ;;  %387 = vmatpush3.bf16.msra.mxu0 %v417_v11  ;;  %v319_v17 = vld [vmem:[%s557_s2] ss:$0 sm:$0xff] }
   0x8   :  { %369 = vmatpush3.bf16.msra.mxu1 %v410_v4  ;;  %388 = vmatprep.subr.bf16.mxu0 %v425_v0  ;;  %v322_v27 = vld [vmem:[%s558_s4] ss:$0 sm:$0xff] }
   0x9   :  { %370 = vmatprep.subr.bf16.mxu1 %v425_v0  ;;  %v331_v35 = vld [vmem:[%s559_s6] ss:$0 sm:$0xff] }
   0xb   :  { %389 = vmatpush3.bf16.msra.mxu0 %v418_v12 }
   0xc   :  { %371 = vmatpush3.bf16.msra.mxu1 %v411_v5  ;;  %390 = vmatprep.subr.bf16.mxu0 %v425_v0 }
   0xd   :  { %372 = vmatprep.subr.bf16.mxu1 %v425_v0 }
   0xf   :  { %391 = vmatpush3.bf16.msra.mxu0 %v419_v13 }
  0x10   :  { %373 = vmatpush3.bf16.msra.mxu1 %v412_v6  ;;  %392 = vmatprep.subr.bf16.mxu0 %v425_v0 }
  0x11   :  { %374 = vmatprep.subr.bf16.mxu1 %v425_v0 }
  0x13   :  { %393 = vmatpush3.bf16.msra.mxu0 %v420_v14 }
  0x14   :  { %375 = vmatpush3.bf16.msra.mxu1 %v413_v7  ;;  %394 = vmatprep.subr.bf16.mxu0 %v425_v0 }
  0x15   :  { %376 = vmatprep.subr.bf16.mxu1 %v425_v0 }
  0x17   :  { %395 = vmatpush3.bf16.msra.mxu0 %v421_v15 }
  0x18   :  { %377 = vmatpush3.bf16.msra.mxu1 %v414_v8  ;;  %396 = vmatprep.subr.bf16.mxu0 %v425_v0 }
  0x19   :  { %378 = vmatprep.subr.bf16.mxu1 %v425_v0 }
  0x1b   :  { %397 = vmatpush3.bf16.msra.mxu0 %v422_v16 }
  0x1c   :  { %379 = vmatpush3.bf16.msra.mxu1 %v415_v9  ;;  %398 = vmatprep.subr.bf16.mxu0 %v425_v0 }
  0x1d   :  { %380 = vmatprep.subr.bf16.mxu1 %v425_v0 }
  0x1f   :  { %399 = vmatpush3.bf16.msra.mxu0 %v423_v25 }
  0x20   :  { %381 = vmatpush3.bf16.msra.mxu1 %v416_v10  ;;  %400 = vmatprep.subr.bf16.mxu0 %v425_v0 }
  0x23   :  { %401 = vmatpush3.bf16.msra.mxu0 %v424_v26 }
  0xd9   :  { %v81_v18 = vpop.f32.mrb[0].mxu0 }
  0xda   :  { %v82_v19 = vadd.f32 %v319_v17, %v81_v18  ;;  %v364_v20 = vpop.f32.mrb[1].mxu0 }
  0xdb   :  { %v84_v21 = vpop.f32.mrb[2].mxu0 }
  0xdc   :  { %v87_v22 = vmax.f32 %v82_v19, 0.0  ;;  %v365_v23 = vpop.f32.mrb[3].mxu0 }
  0xde   :  { %v88_v24 = vpack.c.bf16 %v87_v22, %v87_v22 }
  0xe0   :  { %383 = vmatmul.mubr.bf16.vlgmr.msra.gmra.mrb[0].mxu1 %v88_v24 }
 0x1b3   :  { %v194_v28 = vpop.f32.mrb[0].mxu1 }
 0x1b4   :  { %v195_v29 = vadd.f32 %v322_v27, %v194_v28  ;;  %v384_v30 = vpop.f32.mrb[1].mxu1 }
 0x1b5   :  { %v197_v31 = vpop.f32.mrb[2].mxu1 }
 0x1b6   :  { %v200_v32 = vmax.f32 %v195_v29, 0.0  ;;  %v385_v33 = vpop.f32.mrb[3].mxu1 }
 0x1b8   :  { %v201_v34 = vpack.c.bf16 %v200_v32, %v200_v32 }
 0x1ba   :  { %403 = vmatmul.mubr.bf16.vlgmr.msra.gmra.mrb[4].mxu0 %v201_v34 }
 0x28d   :  { %v307_v36 = vpop.f32.mrb[4].mxu0 }
 0x28e   :  { %v308_v37 = vadd.f32 %v331_v35, %v307_v36  ;;  %v404_v38 = vpop.f32.mrb[5].mxu0 }
 0x28f   :  { %v310_v39 = vpop.f32.mrb[6].mxu0 }
 0x290   :  { %314 = vst.msk [vmem:[%s560_s7] sm:$0xff] %vm313_vm2, %v308_v37  ;;  %v405_v40 = vpop.f32.mrb[7].mxu0 }

</bundles_post_ra>
